<compile_context>
chip_gen: v7x
topology: tpu7x:2x2x1
jax: 0.10.0
libtpu: 0.0.40
codegen_flags: <defaults>
</compile_context>

<pallas_src>
import jax
import jax.numpy as jnp
from jax.experimental import pallas as pl
from jax.experimental.pallas import tpu as pltpu

LANE = 128      # vreg lane width   (last dim alignment)
SUBLANE = 8     # vreg sublane width (second-to-last dim alignment)


def _round_up(n, m):
    return (n + m - 1) // m * m


# --------------------------------------------------------------------------
# Fused kernel: x -> [L1 relu, L2 relu, L3] -> z -> [L4 relu, L5 relu, L6 tanh]
# All operands are VMEM-resident tiles. Intermediates live in vregs / VMEM
# (compiler managed); widest intermediate is [TM, 384] f32.
# --------------------------------------------------------------------------
def _fused_mlp_kernel(x_ref,
                      w1_ref, b1_ref, w2_ref, b2_ref, w3_ref, b3_ref,
                      w4_ref, b4_ref, w5_ref, b5_ref, w6_ref, b6_ref,
                      z_ref, xrec_ref):

    def layer(h, w_ref, b_ref, act):
        y = jnp.dot(h, w_ref[...], preferred_element_type=jnp.float32)
        y = y + b_ref[...]                       # (1, M) broadcast over rows
        if act == "relu":
            y = jnp.maximum(y, 0.0)              # VPU — free filler under MXU
        elif act == "tanh":
            y = jnp.tanh(y)                      # EUP — free filler under MXU
        return y

    x = x_ref[...].astype(jnp.float32)

    h = layer(x, w1_ref, b1_ref, "relu")
    h = layer(h, w2_ref, b2_ref, "relu")
    z = layer(h, w3_ref, b3_ref, "none")
    z_ref[...] = z.astype(z_ref.dtype)           # lane-dense (width = 128k)

    h = layer(z, w4_ref, b4_ref, "relu")
    h = layer(h, w5_ref, b5_ref, "relu")
    xr = layer(h, w6_ref, b6_ref, "tanh")
    xrec_ref[...] = xr.astype(xrec_ref.dtype)    # lane-dense (width = 128k)


# --------------------------------------------------------------------------
# Parameter construction (matches PyTorch nn.Linear default init) + packing
# into lane-aligned, pre-transposed [K, M] form.
# --------------------------------------------------------------------------
def init_linear_params(key, in_features, out_features, dtype=jnp.float32):
    kw, kb = jax.random.split(key)
    bound = 1.0 / jnp.sqrt(jnp.asarray(in_features, dtype))
    # PyTorch stores weight as (out, in); we keep the transposed (in, out) form.
    w_t = jax.random.uniform(kw, (in_features, out_features), dtype,
                             minval=-bound, maxval=bound)
    b = jax.random.uniform(kb, (out_features,), dtype,
                           minval=-bound, maxval=bound)
    return w_t, b


def make_gcn_model_vae_params(key, input_feat_dim, hidden):
    dims = [(input_feat_dim, hidden * 12),
            (hidden * 12, hidden * 4),
            (hidden * 4, hidden),
            (hidden, hidden * 4),
            (hidden * 4, hidden * 12),
            (hidden * 12, input_feat_dim)]
    keys = jax.random.split(key, len(dims))
    return [init_linear_params(k, i, o) for k, (i, o) in zip(keys, dims)]


def pack_params(raw_params):
    """Zero-pad every weight/bias so K and M are multiples of 128 lanes.

    Padding is mathematically inert: padded K-rows of W meet zero-padded
    activation columns, padded M-cols of W (and bias) produce zero activation
    columns that are sliced off at the end.
    """
    packed = []
    for w_t, b in raw_params:
        k, m = w_t.shape
        kp, mp = _round_up(k, LANE), _round_up(m, LANE)
        w_pad = jnp.zeros((kp, mp), w_t.dtype).at[:k, :m].set(w_t)
        b_pad = jnp.zeros((1, mp), b.dtype).at[0, :m].set(b)
        packed.append((w_pad, b_pad))
    return packed


# --------------------------------------------------------------------------
# Forward pass: one fused pallas_call, row-tiled grid, weights resident.
# --------------------------------------------------------------------------
def gcn_model_vae_forward(packed_params, x, hidden, input_feat_dim,
                          *, row_tile=256):
    N, F = x.shape
    Fp = packed_params[0][0].shape[0]   # padded input width
    Hp = packed_params[2][0].shape[1]   # padded latent width  (>= hidden)
    Op = packed_params[5][0].shape[1]   # padded output width  (>= input_feat_dim)

    # Row tiling: TM rows per grid step, weights stay resident across steps.
    tm = min(row_tile, _round_up(N, SUBLANE))
    Np = _round_up(_round_up(N, SUBLANE), tm)
    grid = (Np // tm,)

    x_pad = jnp.zeros((Np, Fp), x.dtype).at[:N, :F].set(x)

    in_specs = [pl.BlockSpec((tm, Fp), lambda i: (i, 0))]
    flat_args = [x_pad]
    for w, b in packed_params:
        in_specs.append(pl.BlockSpec(w.shape, lambda i: (0, 0)))  # resident
        in_specs.append(pl.BlockSpec(b.shape, lambda i: (0, 0)))  # resident
        flat_args += [w, b]

    out_specs = [pl.BlockSpec((tm, Hp), lambda i: (i, 0)),
                 pl.BlockSpec((tm, Op), lambda i: (i, 0))]
    out_shape = (jax.ShapeDtypeStruct((Np, Hp), x.dtype),
                 jax.ShapeDtypeStruct((Np, Op), x.dtype))

    # Advisory cost estimate for the XLA scheduler.
    flops = 0
    bytes_accessed = x_pad.size * 4 + Np * (Hp + Op) * 4
    for w, b in packed_params:
        flops += 2 * Np * w.shape[0] * w.shape[1]
        bytes_accessed += (w.size + b.size) * 4
    cost = pl.CostEstimate(flops=flops,
                           transcendentals=Np * Op,       # tanh on last layer
                           bytes_accessed=bytes_accessed)

    z_pad, xrec_pad = pl.pallas_call(
        _fused_mlp_kernel,
        out_shape=out_shape,
        grid=grid,
        in_specs=in_specs,
        out_specs=out_specs,
        compiler_params=pltpu.CompilerParams(
            # Row blocks are independent -> v7x dual-TC can split them.
            dimension_semantics=("parallel",),
            # Explicit, generous-but-safe budget (actual use << 2 MiB/step,
            # so this also fits v7x's 64 MiB physical VMEM).
            vmem_limit_bytes=32 * 1024 * 1024,
        ),
        cost_estimate=cost,
    )(*flat_args)

    # Slice back to the logical (unpadded) shapes.
    return z_pad[:N, :hidden], xrec_pad[:N, :input_feat_dim]


# --------------------------------------------------------------------------
# Pure-JAX reference (on the raw, unpadded params) for a correctness check.
# --------------------------------------------------------------------------
def _reference_forward(raw_params, x):
    (w1, b1), (w2, b2), (w3, b3), (w4, b4), (w5, b5), (w6, b6) = raw_params
    h = jnp.maximum(x @ w1 + b1, 0.0)
    h = jnp.maximum(h @ w2 + b2, 0.0)
    z = h @ w3 + b3
    h = jnp.maximum(z @ w4 + b4, 0.0)
    h = jnp.maximum(h @ w5 + b5, 0.0)
    x_rec = jnp.tanh(h @ w6 + b6)
    return z, x_rec


if __name__ == "__main__":
    # NOTE: despite the name GCNModelVAE, the PyTorch forward has no adjacency
    # matmul and no reparameterization — it is a deterministic MLP autoencoder,
    # and that is exactly what is implemented here.
    input_feat_dim = 64
    hidden = 32
    batch = 8

    key = jax.random.PRNGKey(0)
    k_params, k_x = jax.random.split(key)

    raw_params = make_gcn_model_vae_params(k_params, input_feat_dim, hidden)
    packed_params = pack_params(raw_params)
    x = jax.random.normal(k_x, (batch, input_feat_dim), dtype=jnp.float32)

    z, x_rec = gcn_model_vae_forward(packed_params, x, hidden, input_feat_dim)
    jax.block_until_ready((z, x_rec))

    z_ref, x_rec_ref = _reference_forward(raw_params, x)
    assert z.shape == (batch, hidden) and x_rec.shape == (batch, input_feat_dim)
    assert jnp.allclose(z, z_ref, atol=1e-4, rtol=1e-4)
    assert jnp.allclose(x_rec, x_rec_ref, atol=1e-4, rtol=1e-4)

    print("KERNEL_OK")
</pallas_src>

<mosaic_0001>
module attributes {stable_mosaic.version = 11 : i64} {
  func.func @_fused_mlp_kernel(%arg0: i32, %arg1: memref<8x128xf32, #tpu.memory_space<vmem>>, %arg2: memref<128x384xf32, #tpu.memory_space<vmem>>, %arg3: memref<1x384xf32, #tpu.memory_space<vmem>>, %arg4: memref<384x128xf32, #tpu.memory_space<vmem>>, %arg5: memref<1x128xf32, #tpu.memory_space<vmem>>, %arg6: memref<128x128xf32, #tpu.memory_space<vmem>>, %arg7: memref<1x128xf32, #tpu.memory_space<vmem>>, %arg8: memref<128x128xf32, #tpu.memory_space<vmem>>, %arg9: memref<1x128xf32, #tpu.memory_space<vmem>>, %arg10: memref<128x384xf32, #tpu.memory_space<vmem>>, %arg11: memref<1x384xf32, #tpu.memory_space<vmem>>, %arg12: memref<384x128xf32, #tpu.memory_space<vmem>>, %arg13: memref<1x128xf32, #tpu.memory_space<vmem>>, %arg14: memref<8x128xf32, #tpu.memory_space<vmem>>, %arg15: memref<8x128xf32, #tpu.memory_space<vmem>>) attributes {dimension_semantics = [#tpu.dimension_semantics<parallel>], iteration_bounds = array<i64: 1>, scalar_prefetch = 0 : i64, scratch_operands = 0 : i64, tpu.core_type = #tpu.core_type<tc>, window_params = [{transform_indices = @transform_0, window_bounds = array<i64: 8, 128>}, {pipeline_mode = #tpu.pipeline_mode<synchronous>, transform_indices = @transform_1, window_bounds = array<i64: 128, 384>}, {pipeline_mode = #tpu.pipeline_mode<synchronous>, transform_indices = @transform_2, window_bounds = array<i64: 1, 384>}, {pipeline_mode = #tpu.pipeline_mode<synchronous>, transform_indices = @transform_3, window_bounds = array<i64: 384, 128>}, {pipeline_mode = #tpu.pipeline_mode<synchronous>, transform_indices = @transform_4, window_bounds = array<i64: 1, 128>}, {pipeline_mode = #tpu.pipeline_mode<synchronous>, transform_indices = @transform_5, window_bounds = array<i64: 128, 128>}, {pipeline_mode = #tpu.pipeline_mode<synchronous>, transform_indices = @transform_6, window_bounds = array<i64: 1, 128>}, {pipeline_mode = #tpu.pipeline_mode<synchronous>, transform_indices = @transform_7, window_bounds = array<i64: 128, 128>}, {pipeline_mode = #tpu.pipeline_mode<synchronous>, transform_indices = @transform_8, window_bounds = array<i64: 1, 128>}, {pipeline_mode = #tpu.pipeline_mode<synchronous>, transform_indices = @transform_9, window_bounds = array<i64: 128, 384>}, {pipeline_mode = #tpu.pipeline_mode<synchronous>, transform_indices = @transform_10, window_bounds = array<i64: 1, 384>}, {pipeline_mode = #tpu.pipeline_mode<synchronous>, transform_indices = @transform_11, window_bounds = array<i64: 384, 128>}, {pipeline_mode = #tpu.pipeline_mode<synchronous>, transform_indices = @transform_12, window_bounds = array<i64: 1, 128>}, {transform_indices = @transform_13, window_bounds = array<i64: 8, 128>}, {transform_indices = @transform_14, window_bounds = array<i64: 8, 128>}]} {
    %c0 = arith.constant 0 : index
    %c0_0 = arith.constant 0 : index
    %0 = vector.load %arg1[%c0, %c0_0] : memref<8x128xf32, #tpu.memory_space<vmem>>, vector<8x128xf32>
    %c0_1 = arith.constant 0 : index
    %c0_2 = arith.constant 0 : index
    %1 = vector.load %arg2[%c0_1, %c0_2] : memref<128x384xf32, #tpu.memory_space<vmem>>, vector<128x384xf32>
    %cst = arith.constant dense<0.000000e+00> : vector<8x384xf32>
    %2 = tpu.matmul %0, %1, %cst {dimension_numbers = #tpu.dot_dimension_numbers<[1], [0], [0], [1], [0, 0, 1, 1], [], []>} : vector<8x128xf32>, vector<128x384xf32>, vector<8x384xf32> -> vector<8x384xf32>
    %c0_3 = arith.constant 0 : index
    %c0_4 = arith.constant 0 : index
    %3 = vector.load %arg3[%c0_3, %c0_4] : memref<1x384xf32, #tpu.memory_space<vmem>>, vector<1x384xf32>
    %4 = vector.broadcast %3 : vector<1x384xf32> to vector<8x384xf32>
    %5 = arith.addf %2, %4 : vector<8x384xf32>
    %cst_5 = arith.constant 0.000000e+00 : f32
    %6 = vector.broadcast %cst_5 : f32 to vector<8x384xf32>
    %7 = arith.maximumf %5, %6 : vector<8x384xf32>
    %c0_6 = arith.constant 0 : index
    %c0_7 = arith.constant 0 : index
    %8 = vector.load %arg4[%c0_6, %c0_7] : memref<384x128xf32, #tpu.memory_space<vmem>>, vector<384x128xf32>
    %cst_8 = arith.constant dense<0.000000e+00> : vector<8x128xf32>
    %9 = tpu.matmul %7, %8, %cst_8 {dimension_numbers = #tpu.dot_dimension_numbers<[1], [0], [0], [1], [0, 0, 1, 1], [], []>} : vector<8x384xf32>, vector<384x128xf32>, vector<8x128xf32> -> vector<8x128xf32>
    %c0_9 = arith.constant 0 : index
    %c0_10 = arith.constant 0 : index
    %10 = vector.load %arg5[%c0_9, %c0_10] : memref<1x128xf32, #tpu.memory_space<vmem>>, vector<1x128xf32>
    %11 = vector.broadcast %10 : vector<1x128xf32> to vector<8x128xf32>
    %12 = arith.addf %9, %11 : vector<8x128xf32>
    %cst_11 = arith.constant 0.000000e+00 : f32
    %13 = vector.broadcast %cst_11 : f32 to vector<8x128xf32>
    %14 = arith.maximumf %12, %13 : vector<8x128xf32>
    %c0_12 = arith.constant 0 : index
    %c0_13 = arith.constant 0 : index
    %15 = vector.load %arg6[%c0_12, %c0_13] : memref<128x128xf32, #tpu.memory_space<vmem>>, vector<128x128xf32>
    %cst_14 = arith.constant dense<0.000000e+00> : vector<8x128xf32>
    %16 = tpu.matmul %14, %15, %cst_14 {dimension_numbers = #tpu.dot_dimension_numbers<[1], [0], [0], [1], [0, 0, 1, 1], [], []>} : vector<8x128xf32>, vector<128x128xf32>, vector<8x128xf32> -> vector<8x128xf32>
    %c0_15 = arith.constant 0 : index
    %c0_16 = arith.constant 0 : index
    %17 = vector.load %arg7[%c0_15, %c0_16] : memref<1x128xf32, #tpu.memory_space<vmem>>, vector<1x128xf32>
    %18 = vector.broadcast %17 : vector<1x128xf32> to vector<8x128xf32>
    %19 = arith.addf %16, %18 : vector<8x128xf32>
    %c0_17 = arith.constant 0 : index
    %c0_18 = arith.constant 0 : index
    %20 = vector.load %arg14[%c0_17, %c0_18] : memref<8x128xf32, #tpu.memory_space<vmem>>, vector<8x128xf32>
    tpu.vector_store %arg14[%c0_17, %c0_18], %19 {strides = array<i32>} : memref<8x128xf32, #tpu.memory_space<vmem>>, vector<8x128xf32>,
    %c0_19 = arith.constant 0 : index
    %c0_20 = arith.constant 0 : index
    %21 = vector.load %arg8[%c0_19, %c0_20] : memref<128x128xf32, #tpu.memory_space<vmem>>, vector<128x128xf32>
    %cst_21 = arith.constant dense<0.000000e+00> : vector<8x128xf32>
    %22 = tpu.matmul %19, %21, %cst_21 {dimension_numbers = #tpu.dot_dimension_numbers<[1], [0], [0], [1], [0, 0, 1, 1], [], []>} : vector<8x128xf32>, vector<128x128xf32>, vector<8x128xf32> -> vector<8x128xf32>
    %c0_22 = arith.constant 0 : index
    %c0_23 = arith.constant 0 : index
    %23 = vector.load %arg9[%c0_22, %c0_23] : memref<1x128xf32, #tpu.memory_space<vmem>>, vector<1x128xf32>
    %24 = vector.broadcast %23 : vector<1x128xf32> to vector<8x128xf32>
    %25 = arith.addf %22, %24 : vector<8x128xf32>
    %cst_24 = arith.constant 0.000000e+00 : f32
    %26 = vector.broadcast %cst_24 : f32 to vector<8x128xf32>
    %27 = arith.maximumf %25, %26 : vector<8x128xf32>
    %c0_25 = arith.constant 0 : index
    %c0_26 = arith.constant 0 : index
    %28 = vector.load %arg10[%c0_25, %c0_26] : memref<128x384xf32, #tpu.memory_space<vmem>>, vector<128x384xf32>
    %cst_27 = arith.constant dense<0.000000e+00> : vector<8x384xf32>
    %29 = tpu.matmul %27, %28, %cst_27 {dimension_numbers = #tpu.dot_dimension_numbers<[1], [0], [0], [1], [0, 0, 1, 1], [], []>} : vector<8x128xf32>, vector<128x384xf32>, vector<8x384xf32> -> vector<8x384xf32>
    %c0_28 = arith.constant 0 : index
    %c0_29 = arith.constant 0 : index
    %30 = vector.load %arg11[%c0_28, %c0_29] : memref<1x384xf32, #tpu.memory_space<vmem>>, vector<1x384xf32>
    %31 = vector.broadcast %30 : vector<1x384xf32> to vector<8x384xf32>
    %32 = arith.addf %29, %31 : vector<8x384xf32>
    %cst_30 = arith.constant 0.000000e+00 : f32
    %33 = vector.broadcast %cst_30 : f32 to vector<8x384xf32>
    %34 = arith.maximumf %32, %33 : vector<8x384xf32>
    %c0_31 = arith.constant 0 : index
    %c0_32 = arith.constant 0 : index
    %35 = vector.load %arg12[%c0_31, %c0_32] : memref<384x128xf32, #tpu.memory_space<vmem>>, vector<384x128xf32>
    %cst_33 = arith.constant dense<0.000000e+00> : vector<8x128xf32>
    %36 = tpu.matmul %34, %35, %cst_33 {dimension_numbers = #tpu.dot_dimension_numbers<[1], [0], [0], [1], [0, 0, 1, 1], [], []>} : vector<8x384xf32>, vector<384x128xf32>, vector<8x128xf32> -> vector<8x128xf32>
    %c0_34 = arith.constant 0 : index
    %c0_35 = arith.constant 0 : index
    %37 = vector.load %arg13[%c0_34, %c0_35] : memref<1x128xf32, #tpu.memory_space<vmem>>, vector<1x128xf32>
    %38 = vector.broadcast %37 : vector<1x128xf32> to vector<8x128xf32>
    %39 = arith.addf %36, %38 : vector<8x128xf32>
    %40 = math.tanh %39 : vector<8x128xf32>
    %c0_36 = arith.constant 0 : index
    %c0_37 = arith.constant 0 : index
    %41 = vector.load %arg15[%c0_36, %c0_37] : memref<8x128xf32, #tpu.memory_space<vmem>>, vector<8x128xf32>
    tpu.vector_store %arg15[%c0_36, %c0_37], %40 {strides = array<i32>} : memref<8x128xf32, #tpu.memory_space<vmem>>, vector<8x128xf32>,
    return
  }
  func.func @transform_0(%arg0: i32) -> (i32, i32) {
    %c0_i32 = arith.constant 0 : i32
    %c0_i32_0 = arith.constant 0 : i32
    return %arg0, %c0_i32 : i32, i32
  }
  func.func @transform_1(%arg0: i32) -> (i32, i32) {
    %c0_i32 = arith.constant 0 : i32
    %c0_i32_0 = arith.constant 0 : i32
    %c0_i32_1 = arith.constant 0 : i32
    return %c0_i32, %c0_i32_0 : i32, i32
  }
  func.func @transform_2(%arg0: i32) -> (i32, i32) {
    %c0_i32 = arith.constant 0 : i32
    %c0_i32_0 = arith.constant 0 : i32
    %c0_i32_1 = arith.constant 0 : i32
    return %c0_i32, %c0_i32_0 : i32, i32
  }
  func.func @transform_3(%arg0: i32) -> (i32, i32) {
    %c0_i32 = arith.constant 0 : i32
    %c0_i32_0 = arith.constant 0 : i32
    %c0_i32_1 = arith.constant 0 : i32
    return %c0_i32, %c0_i32_0 : i32, i32
  }
  func.func @transform_4(%arg0: i32) -> (i32, i32) {
    %c0_i32 = arith.constant 0 : i32
    %c0_i32_0 = arith.constant 0 : i32
    %c0_i32_1 = arith.constant 0 : i32
    return %c0_i32, %c0_i32_0 : i32, i32
  }
  func.func @transform_5(%arg0: i32) -> (i32, i32) {
    %c0_i32 = arith.constant 0 : i32
    %c0_i32_0 = arith.constant 0 : i32
    %c0_i32_1 = arith.constant 0 : i32
    return %c0_i32, %c0_i32_0 : i32, i32
  }
  func.func @transform_6(%arg0: i32) -> (i32, i32) {
    %c0_i32 = arith.constant 0 : i32
    %c0_i32_0 = arith.constant 0 : i32
    %c0_i32_1 = arith.constant 0 : i32
    return %c0_i32, %c0_i32_0 : i32, i32
  }
  func.func @transform_7(%arg0: i32) -> (i32, i32) {
    %c0_i32 = arith.constant 0 : i32
    %c0_i32_0 = arith.constant 0 : i32
    %c0_i32_1 = arith.constant 0 : i32
    return %c0_i32, %c0_i32_0 : i32, i32
  }
  func.func @transform_8(%arg0: i32) -> (i32, i32) {
    %c0_i32 = arith.constant 0 : i32
    %c0_i32_0 = arith.constant 0 : i32
    %c0_i32_1 = arith.constant 0 : i32
    return %c0_i32, %c0_i32_0 : i32, i32
  }
  func.func @transform_9(%arg0: i32) -> (i32, i32) {
    %c0_i32 = arith.constant 0 : i32
    %c0_i32_0 = arith.constant 0 : i32
    %c0_i32_1 = arith.constant 0 : i32
    return %c0_i32, %c0_i32_0 : i32, i32
  }
  func.func @transform_10(%arg0: i32) -> (i32, i32) {
    %c0_i32 = arith.constant 0 : i32
    %c0_i32_0 = arith.constant 0 : i32
    %c0_i32_1 = arith.constant 0 : i32
    return %c0_i32, %c0_i32_0 : i32, i32
  }
  func.func @transform_11(%arg0: i32) -> (i32, i32) {
    %c0_i32 = arith.constant 0 : i32
    %c0_i32_0 = arith.constant 0 : i32
    %c0_i32_1 = arith.constant 0 : i32
    return %c0_i32, %c0_i32_0 : i32, i32
  }
  func.func @transform_12(%arg0: i32) -> (i32, i32) {
    %c0_i32 = arith.constant 0 : i32
    %c0_i32_0 = arith.constant 0 : i32
    %c0_i32_1 = arith.constant 0 : i32
    return %c0_i32, %c0_i32_0 : i32, i32
  }
  func.func @transform_13(%arg0: i32) -> (i32, i32) {
    %c0_i32 = arith.constant 0 : i32
    %c0_i32_0 = arith.constant 0 : i32
    return %arg0, %c0_i32 : i32, i32
  }
  func.func @transform_14(%arg0: i32) -> (i32, i32) {
    %c0_i32 = arith.constant 0 : i32
    %c0_i32_0 = arith.constant 0 : i32
    return %arg0, %c0_i32 : i32, i32
  }
}

</mosaic_0001>

<bundles_post_ra>
// kernel: tpu_custom_call.1
= control target key start
LH: loop header
LB: loop body
LE: loop exit
PB: predicated region body
PF: predicated region fallthrough
CT: control target
= control target key end

     0   :  { %20 = vsyncpa [#allocation3], 0  ;;  %s2373_s0 = inlined_call_operand.hbm [shape: f32[8,128], index: 0, kind: input, shape index: {}]   ;;  %s2374_s1 = inlined_call_operand.hbm [shape: f32[128,384], index: 1, kind: input, shape index: {}]   ;;  %s2375_s2 = inlined_call_operand.vmem [shape: f32[1,384], index: 2, kind: input, shape index: {}]   ;;  %s2376_s3 = inlined_call_operand.hbm [shape: f32[384,128], index: 3, kind: input, shape index: {}]   ;;  %s2377_s4 = inlined_call_operand.vmem [shape: f32[1,128], index: 4, kind: input, shape index: {}]   ;;  %s2378_s5 = inlined_call_operand.hbm [shape: f32[128,128], index: 5, kind: input, shape index: {}]   ;;  %s2379_s6 = inlined_call_operand.vmem [shape: f32[1,128], index: 6, kind: input, shape index: {}]   ;;  %s2380_s7 = inlined_call_operand.hbm [shape: f32[128,128], index: 7, kind: input, shape index: {}]   ;;  %s2381_s8 = inlined_call_operand.vmem [shape: f32[1,128], index: 8, kind: input, shape index: {}]   ;;  %s2382_s9 = inlined_call_operand.hbm [shape: f32[128,384], index: 9, kind: input, shape index: {}]   ;;  %s2383_s10 = inlined_call_operand.vmem [shape: f32[1,384], index: 10, kind: input, shape index: {}]   ;;  %s2384_s11 = inlined_call_operand.hbm [shape: f32[384,128], index: 11, kind: input, shape index: {}]   ;;  %s2385_s12 = inlined_call_operand.vmem [shape: f32[1,128], index: 12, kind: input, shape index: {}]   ;;  %s2386_s13 = inlined_call_operand.hbm [shape: f32[8,128], index: 13, kind: output, shape index: {0}]   ;;  %s2387_s14 = inlined_call_operand.hbm [shape: f32[8,128], index: 14, kind: output, shape index: {1}]  }
   0x1   :  { %21 = vsyncpa [#allocation6], 0 }
   0x2   :  { %22 = vsyncpa [#allocation9], 0 }
   0x3   :  { %23 = vsyncpa [#allocation12], 0 }
   0x4   :  { %24 = vsyncpa [#allocation4], 0 }
   0x5   :  { %25 = vsyncpa [#allocation16], 0  ;;  %s2059_s29 = smov [#allocation5]   ;;  %s1849_s17 = scalar_lea.hbm %s2374_s1, 6144 }
   0x6   :  { %s41_s30 = sshll.u32 %s2059_s29, 4  ;;  %p1850_p0 = scmp.ne.s32.totalorder %s2374_s1, %s1849_s17  ;;  %s42_s30 = int_to_ptr.vmem [resolvable:$true] %s41_s30 }
   0x7   :  { %p1853_p1 = scmp.lt.u32.totalorder %s1849_s17, %s2374_s1 }
   0x9   :  { %p1855_p2 = pnand %p1853_p1, %p1850_p0 }
   0xb   :  { %1858 = shalt.err (!%p1855_p2)
}
   0xc   :  { %s1859_s22 = scalar_lea.vmem %s42_s30, 6144  ;;  %p1864_p4 = scmp.lt.s32.totalorder %s42_s30, %s42_s30 }
   0xd   :  { %p1860_p3 = scmp.ne.s32.totalorder %s42_s30, %s1859_s22  ;;  %p1865_p5 = scmp.lt.s32.totalorder %s1859_s22, %s1859_s22 }
   0xf   :  { %p1866_p6 = por %p1865_p5, %p1864_p4 }
  0x11   :  { %p1867_p7 = pnand %p1866_p6, %p1860_p3 }
  0x13   :  { %1870 = shalt.err (!%p1867_p7)
}
  0x14   :  { %s2060_s23 = smov 384   ;;  %s2061_s24 = smov 24  }
  0x15   :  { %47 = dma.hbm_to_vmem [thread:$0]  %s2374_s1, 6144, %s42_s30, [#allocation6], %s2060_s23, %s2060_s23, %s2061_s24  }
  0x16   :  { %s2062_s27 = smov [#allocation8]   ;;  %s2063_s29 = smov [#allocation11]  }
  0x17   :  { %s69_s28 = sshll.u32 %s2062_s27, 4  ;;  %s97_s15 = sshll.u32 %s2063_s29, 4  ;;  %s70_s28 = int_to_ptr.vmem [resolvable:$true] %s69_s28  ;;  %s98_s15 = int_to_ptr.vmem [resolvable:$true] %s97_s15 }
  0x18   :  { %s1871_s18 = scalar_lea.hbm %s2378_s5, 2048 }
  0x19   :  { %p1872_p8 = scmp.ne.s32.totalorder %s2378_s5, %s1871_s18  ;;  %p1875_p9 = scmp.lt.u32.totalorder %s1871_s18, %s2378_s5 }
  0x1b   :  { %p1877_p10 = pnand %p1875_p9, %p1872_p8 }
  0x1d   :  { %1880 = shalt.err (!%p1877_p10)
}
  0x1e   :  { %s1881_s1 = scalar_lea.vmem %s70_s28, 2048  ;;  %p1886_p12 = scmp.lt.s32.totalorder %s70_s28, %s70_s28 }
  0x1f   :  { %p1882_p11 = scmp.ne.s32.totalorder %s70_s28, %s1881_s1  ;;  %p1887_p13 = scmp.lt.s32.totalorder %s1881_s1, %s1881_s1 }
  0x21   :  { %p1888_p0 = por %p1887_p13, %p1886_p12 }
  0x23   :  { %p1889_p1 = pnand %p1888_p0, %p1882_p11 }
  0x25   :  { %1892 = shalt.err (!%p1889_p1)
}
  0x26   :  { %s2064_s30 = smov 128   ;;  %s2065_s25 = smov 8  }
  0x27   :  { %75 = dma.hbm_to_vmem [thread:$0]  %s2378_s5, 2048, %s70_s28, [#allocation9], %s2064_s30, %s2064_s30, %s2065_s25  }
  0x28   :  { %s1893_s17 = scalar_lea.hbm %s2382_s9, 6144 }
  0x29   :  { %p1894_p2 = scmp.ne.s32.totalorder %s2382_s9, %s1893_s17  ;;  %p1897_p3 = scmp.lt.u32.totalorder %s1893_s17, %s2382_s9 }
  0x2b   :  { %p1899_p4 = pnand %p1897_p3, %p1894_p2 }
  0x2d   :  { %1902 = shalt.err (!%p1899_p4)
}
  0x2e   :  { %s1903_s22 = scalar_lea.vmem %s98_s15, 6144  ;;  %p1908_p6 = scmp.lt.s32.totalorder %s98_s15, %s98_s15 }
  0x2f   :  { %p1904_p5 = scmp.ne.s32.totalorder %s98_s15, %s1903_s22  ;;  %p1909_p7 = scmp.lt.s32.totalorder %s1903_s22, %s1903_s22 }
  0x31   :  { %p1910_p8 = por %p1909_p7, %p1908_p6 }
  0x33   :  { %p1911_p9 = pnand %p1910_p8, %p1904_p5 }
  0x35   :  { %1914 = shalt.err (!%p1911_p9)
}
  0x36   :  { %103 = dma.hbm_to_vmem [thread:$0]  %s2382_s9, 6144, %s98_s15, [#allocation12], %s2060_s23, %s2060_s23, %s2061_s24  }
  0x37   :  { %s2066_s1 = smov [#allocation2]   ;;  %s2067_s27 = smov [#allocation7]  }
  0x38   :  { %s32_s26 = sshll.u32 %s2066_s1, 4  ;;  %s55_s29 = sshll.u32 %s2067_s27, 4  ;;  %s33_s26 = int_to_ptr.vmem [resolvable:$true] %s32_s26  ;;  %s56_s29 = int_to_ptr.vmem [resolvable:$true] %s55_s29 }
  0x39   :  { %s1915_s18 = scalar_lea.hbm %s2373_s0, 128 }
  0x3a   :  { %p1916_p10 = scmp.ne.s32.totalorder %s2373_s0, %s1915_s18  ;;  %p1919_p11 = scmp.lt.u32.totalorder %s1915_s18, %s2373_s0 }
  0x3c   :  { %p1921_p12 = pnand %p1919_p11, %p1916_p10 }
  0x3e   :  { %1924 = shalt.err (!%p1921_p12)
}
  0x3f   :  { %s1925_s9 = scalar_lea.vmem %s33_s26, 128  ;;  %p1930_p0 = scmp.lt.s32.totalorder %s33_s26, %s33_s26 }
  0x40   :  { %p1926_p13 = scmp.ne.s32.totalorder %s33_s26, %s1925_s9  ;;  %p1931_p1 = scmp.lt.s32.totalorder %s1925_s9, %s1925_s9 }
  0x42   :  { %p1932_p2 = por %p1931_p1, %p1930_p0 }
  0x44   :  { %p1933_p3 = pnand %p1932_p2, %p1926_p13 }
  0x46   :  { %1936 = shalt.err (!%p1933_p3)
}
  0x47   :  { %35 = dma.hbm_to_vmem [thread:$0]  %s2373_s0, 128, %s33_s26, [#allocation3]  }
  0x48   :  { %s1937_s28 = scalar_lea.hbm %s2376_s3, 6144 }
  0x49   :  { %p1938_p4 = scmp.ne.s32.totalorder %s2376_s3, %s1937_s28  ;;  %p1941_p5 = scmp.lt.u32.totalorder %s1937_s28, %s2376_s3 }
  0x4b   :  { %p1943_p6 = pnand %p1941_p5, %p1938_p4 }
  0x4d   :  { %1946 = shalt.err (!%p1943_p6)
}
  0x4e   :  { %s1947_s18 = scalar_lea.vmem %s56_s29, 6144  ;;  %p1952_p8 = scmp.lt.s32.totalorder %s56_s29, %s56_s29 }
  0x4f   :  { %p1948_p7 = scmp.ne.s32.totalorder %s56_s29, %s1947_s18  ;;  %p1953_p9 = scmp.lt.s32.totalorder %s1947_s18, %s1947_s18 }
  0x51   :  { %p1954_p10 = por %p1953_p9, %p1952_p8 }
  0x53   :  { %p1955_p11 = pnand %p1954_p10, %p1948_p7 }
  0x55   :  { %1958 = shalt.err (!%p1955_p11)
}
  0x56   :  { %61 = dma.hbm_to_vmem [thread:$0]  %s2376_s3, 6144, %s56_s29, [#allocation6], %s2064_s30, %s2064_s30, %s2065_s25  }
  0x57   :  { %s2068_s19 = smov [#allocation10]   ;;  %s2069_s21 = smov [#allocation13]  }
  0x58   :  { %s83_s20 = sshll.u32 %s2068_s19, 4  ;;  %s111_s22 = sshll.u32 %s2069_s21, 4  ;;  %s84_s20 = int_to_ptr.vmem [resolvable:$true] %s83_s20  ;;  %s112_s22 = int_to_ptr.vmem [resolvable:$true] %s111_s22 }
  0x59   :  { %s1959_s24 = scalar_lea.hbm %s2380_s7, 2048 }
  0x5a   :  { %p1960_p12 = scmp.ne.s32.totalorder %s2380_s7, %s1959_s24  ;;  %p1963_p13 = scmp.lt.u32.totalorder %s1959_s24, %s2380_s7 }
  0x5c   :  { %p1965_p0 = pnand %p1963_p13, %p1960_p12 }
  0x5e   :  { %1968 = shalt.err (!%p1965_p0)
}
  0x5f   :  { %s1969_s3 = scalar_lea.vmem %s84_s20, 2048  ;;  %p1974_p2 = scmp.lt.s32.totalorder %s84_s20, %s84_s20 }
  0x60   :  { %p1970_p1 = scmp.ne.s32.totalorder %s84_s20, %s1969_s3  ;;  %p1975_p3 = scmp.lt.s32.totalorder %s1969_s3, %s1969_s3 }
  0x62   :  { %p1976_p4 = por %p1975_p3, %p1974_p2 }
  0x64   :  { %p1977_p5 = pnand %p1976_p4, %p1970_p1 }
  0x66   :  { %1980 = shalt.err (!%p1977_p5)
}
  0x67   :  { %89 = dma.hbm_to_vmem [thread:$0]  %s2380_s7, 2048, %s84_s20, [#allocation9], %s2064_s30, %s2064_s30, %s2065_s25  }
  0x68   :  { %s1981_s18 = scalar_lea.hbm %s2384_s11, 6144 }
  0x69   :  { %p1982_p6 = scmp.ne.s32.totalorder %s2384_s11, %s1981_s18  ;;  %p1985_p7 = scmp.lt.u32.totalorder %s1981_s18, %s2384_s11 }
  0x6b   :  { %p1987_p8 = pnand %p1985_p7, %p1982_p6 }
  0x6d   :  { %1990 = shalt.err (!%p1987_p8)
}
  0x6e   :  { %s1991_s9 = scalar_lea.vmem %s112_s22, 6144  ;;  %p1996_p10 = scmp.lt.s32.totalorder %s112_s22, %s112_s22 }
  0x6f   :  { %p1992_p9 = scmp.ne.s32.totalorder %s112_s22, %s1991_s9  ;;  %p1997_p11 = scmp.lt.s32.totalorder %s1991_s9, %s1991_s9 }
  0x71   :  { %p1998_p12 = por %p1997_p11, %p1996_p10 }
  0x73   :  { %p1999_p13 = pnand %p1998_p12, %p1992_p9 }
  0x75   :  { %2002 = shalt.err (!%p1999_p13)
}
  0x76   :  { %117 = dma.hbm_to_vmem [thread:$0]  %s2384_s11, 6144, %s112_s22, [#allocation12], %s2064_s30, %s2064_s30, %s2065_s25  }
  0x77   :  { %2047 = dma.done.wait [#allocation3], 128  }
  0x78   :  { %2048 = vsyncadd [#allocation3], 4294967168 }
  0x79   :  { %2049 = dma.done.wait [#allocation6], 12288  }
  0x7a   :  { %2050 = vsyncadd [#allocation6], 4294955008 }
  0x7b   :  { %2051 = dma.done.wait [#allocation9], 4096  }
  0x7c   :  { %2052 = vsyncadd [#allocation9], 4294963200 }
  0x7d   :  { %2053 = dma.done.wait [#allocation12], 12288  }
  0x7e   :  { %2054 = vsyncadd [#allocation12], 4294955008  ;;  %v2070_v0 = vmov 0.0|0.0   ;;  %v2071_v1 = vmov 0.0   ;;  %vm2072_vm0 = vmmov 0   ;;  %v143_v2 = vld [vmem:[#allocation5 + $0x8] sm:$0xff] }
  0x7f   :  { %1591 = vmatprep.subr.bf16.mxu1 %v2070_v0  ;;  %271 = vmatprep.mubr.f32.mxu0 %v2071_v1  ;;  %v146_v3 = vld [vmem:[#allocation5 + $0x20] sm:$0xff]  ;;  %v145_v6 = vld [vmem:[#allocation5 + $0x18] sm:$0xff]  ;;  %v152_v8 = vld [vmem:[#allocation5 + $0x50] sm:$0xff] }
  0x80   :  { %1381 = vmatprep.mubr.msk.f32.mxu1 %vm2072_vm0, %v2071_v1  ;;  %v142_v4 = vld [vmem:[#allocation5] sm:$0xff]  ;;  %v1559_v5 = vpack.c.bf16 %v146_v3, %v143_v2  ;;  %v149_v7 = vld [vmem:[#allocation5 + $0x38] sm:$0xff]  ;;  %v148_v11 = vld [vmem:[#allocation5 + $0x30] sm:$0xff] }
  0x81   :  { %v1561_v9 = vpack.c.bf16 %v145_v6, %v142_v4  ;;  %v1563_v10 = vpack.c.bf16 %v152_v8, %v149_v7  ;;  %v151_v12 = vld [vmem:[#allocation5 + $0x48] sm:$0xff]  ;;  %v144_v13 = vld [vmem:[#allocation5 + $0x10] sm:$0xff]  ;;  %v158_v16 = vld [vmem:[#allocation5 + $0x80] sm:$0xff] }
  0x82   :  { %1560 = vmatprep.subr.bf16.mxu0 %v1559_v5  ;;  %v147_v14 = vld [vmem:[#allocation5 + $0x28] sm:$0xff]  ;;  %v1565_v17 = vpack.c.bf16 %v151_v12, %v148_v11  ;;  %v150_v19 = vld [vmem:[#allocation5 + $0x40] sm:$0xff]  ;;  %v157_v22 = vld [vmem:[#allocation5 + $0x78] sm:$0xff] }
  0x83   :  { %v155_v15 = vld [vmem:[#allocation5 + $0x68] sm:$0xff]  ;;  %1562 = vmatpush1.bf16.msra.mxu0 %v1561_v9  ;;  %v1592_v18 = vpack.c.bf16 %v147_v14, %v144_v13  ;;  %v154_v21 = vld [vmem:[#allocation5 + $0x60] sm:$0xff]  ;;  %v153_v23 = vld [vmem:[#allocation5 + $0x58] sm:$0xff] }
  0x84   :  { %1564 = vmatprep.subr.bf16.mxu0 %v1563_v10  ;;  %v1567_v20 = vpack.c.bf16 %v158_v16, %v155_v15  ;;  %v1595_v24 = vpack.c.bf16 %v153_v23, %v150_v19  ;;  %v161_v25 = vld [vmem:[#allocation5 + $0x98] sm:$0xff]  ;;  %v164_v26 = vld [vmem:[#allocation5 + $0xb0] sm:$0xff]  ;;  %v159_v28 = vld [vmem:[#allocation5 + $0x88] sm:$0xff]  ;;  %v1569_v29 = vpack.c.bf16 %v157_v22, %v154_v21 }
  0x85   :  { %1593 = vmatpush3.bf16.msra.mxu1 %v1592_v18  ;;  %v156_v27 = vld [vmem:[#allocation5 + $0x70] sm:$0xff]  ;;  %v1571_v30 = vpack.c.bf16 %v164_v26, %v161_v25  ;;  %v163_v32 = vld [vmem:[#allocation5 + $0xa8] sm:$0xff]  ;;  %v170_v35 = vld [vmem:[#allocation5 + $0xe0] sm:$0xff] }
  0x86   :  { %1594 = vmatprep.subr.bf16.mxu1 %v2070_v0  ;;  %v160_v31 = vld [vmem:[#allocation5 + $0x90] sm:$0xff]  ;;  %v1598_v33 = vpack.c.bf16 %v159_v28, %v156_v27  ;;  %v167_v34 = vld [vmem:[#allocation5 + $0xc8] sm:$0xff]  ;;  %v162_v36 = vld [vmem:[#allocation5 + $0xa0] sm:$0xff] }
  0x87   :  { %1566 = vmatpush1.bf16.msra.mxu0 %v1565_v17  ;;  %v165_v37 = vld [vmem:[#allocation5 + $0xb8] sm:$0xff]  ;;  %v1573_v38 = vpack.c.bf16 %v163_v32, %v160_v31  ;;  %v1575_v39 = vpack.c.bf16 %v170_v35, %v167_v34  ;;  %v166_v40 = vld [vmem:[#allocation5 + $0xc0] sm:$0xff]  ;;  %v176_v44 = vld [vmem:[#allocation5 + $0x110] sm:$0xff] }
  0x88   :  { %1568 = vmatprep.subr.bf16.mxu0 %v1567_v20  ;;  %v169_v41 = vld [vmem:[#allocation5 + $0xd8] sm:$0xff]  ;;  %v1601_v42 = vpack.c.bf16 %v165_v37, %v162_v36  ;;  %v168_v45 = vld [vmem:[#allocation5 + $0xd0] sm:$0xff]  ;;  %v171_v46 = vld [vmem:[#allocation5 + $0xe8] sm:$0xff] }
  0x89   :  { %1596 = vmatpush3.bf16.msra.mxu1 %v1595_v24  ;;  %v173_v43 = vld [vmem:[#allocation5 + $0xf8] sm:$0xff]  ;;  %v1577_v47 = vpack.c.bf16 %v169_v41, %v166_v40  ;;  %v172_v49 = vld [vmem:[#allocation5 + $0xf0] sm:$0xff]  ;;  %v175_v50 = vld [vmem:[#allocation5 + $0x108] sm:$0xff]  ;;  %v1604_v51 = vpack.c.bf16 %v171_v46, %v168_v45 }
  0x8a   :  { %1597 = vmatprep.subr.bf16.mxu1 %v2070_v0  ;;  %v1579_v48 = vpack.c.bf16 %v176_v44, %v173_v43  ;;  %v179_v52 = vld [vmem:[#allocation5 + $0x128] sm:$0xff]  ;;  %v182_v53 = vld [vmem:[#allocation5 + $0x140] sm:$0xff]  ;;  %v177_v55 = vld [vmem:[#allocation5 + $0x118] sm:$0xff]  ;;  %v1581_v56 = vpack.c.bf16 %v175_v50, %v172_v49 }
  0x8b   :  { %1570 = vmatpush1.bf16.msra.mxu0 %v1569_v29  ;;  %v174_v54 = vld [vmem:[#allocation5 + $0x100] sm:$0xff]  ;;  %v1583_v57 = vpack.c.bf16 %v182_v53, %v179_v52  ;;  %v181_v59 = vld [vmem:[#allocation5 + $0x138] sm:$0xff]  ;;  %v188_v62 = vld [vmem:[#allocation5 + $0x170] sm:$0xff] }
  0x8c   :  { %1572 = vmatprep.subr.bf16.mxu0 %v1571_v30  ;;  %v178_v58 = vld [vmem:[#allocation5 + $0x120] sm:$0xff]  ;;  %v1607_v60 = vpack.c.bf16 %v177_v55, %v174_v54  ;;  %v185_v61 = vld [vmem:[#allocation5 + $0x158] sm:$0xff]  ;;  %v180_v63 = vld [vmem:[#allocation5 + $0x130] sm:$0xff] }
  0x8d   :  { %1599 = vmatpush3.bf16.msra.mxu1 %v1598_v33  ;;  %v183_v2 = vld [vmem:[#allocation5 + $0x148] sm:$0xff]  ;;  %v1585_v3 = vpack.c.bf16 %v181_v59, %v178_v58  ;;  %v1587_v4 = vpack.c.bf16 %v188_v62, %v185_v61  ;;  %v184_v5 = vld [vmem:[#allocation5 + $0x150] sm:$0xff]  ;;  %v367_v8 = vld [vmem:[#allocation7 + $0x80] sm:$0xff] }
  0x8e   :  { %1600 = vmatprep.subr.bf16.mxu1 %v2070_v0  ;;  %v187_v6 = vld [vmem:[#allocation5 + $0x168] sm:$0xff]  ;;  %v1610_v7 = vpack.c.bf16 %v183_v2, %v180_v63  ;;  %v186_v10 = vld [vmem:[#allocation5 + $0x160] sm:$0xff]  ;;  %v189_v11 = vld [vmem:[#allocation5 + $0x178] sm:$0xff] }
  0x8f   :  { %1574 = vmatpush1.bf16.msra.mxu0 %v1573_v38  ;;  %v368_v9 = vld [vmem:[#allocation7 + $0x88] sm:$0xff]  ;;  %v1589_v12 = vpack.c.bf16 %v187_v6, %v184_v5  ;;  %v351_v14 = vld [vmem:[#allocation7] sm:$0xff]  ;;  %v1613_v16 = vpack.c.bf16 %v189_v11, %v186_v10  ;;  %v369_v17 = vld [vmem:[#allocation7 + $0x90] sm:$0xff] }
  0x90   :  { %1576 = vmatprep.subr.bf16.mxu0 %v1575_v39  ;;  %v1615_v13 = vpack.c.bf16 %v368_v9, %v367_v8  ;;  %v352_v15 = vld [vmem:[#allocation7 + $0x8] sm:$0xff]  ;;  %v370_v18 = vld [vmem:[#allocation7 + $0x98] sm:$0xff]  ;;  %v383_v19 = vld [vmem:[#allocation7 + $0x100] sm:$0xff] }
  0x91   :  { %1602 = vmatpush3.bf16.msra.mxu1 %v1601_v42  ;;  %v384_v20 = vld [vmem:[#allocation7 + $0x108] sm:$0xff]  ;;  %v141_v21 = vld [vmem:[#allocation2] sm:$0xff]  ;;  %v1617_v22 = vpack.c.bf16 %v352_v15, %v351_v14  ;;  %v1619_v23 = vpack.c.bf16 %v370_v18, %v369_v17  ;;  %v353_v24 = vld [vmem:[#allocation7 + $0x10] sm:$0xff] }
  0x92   :  { %1603 = vmatprep.subr.bf16.mxu1 %v2070_v0  ;;  %v354_v25 = vld [vmem:[#allocation7 + $0x18] sm:$0xff]  ;;  %v1648_v26 = vpack.c.bf16 %v384_v20, %v383_v19  ;;  %v371_v27 = vld [vmem:[#allocation7 + $0xa0] sm:$0xff]  ;;  %v372_v28 = vld [vmem:[#allocation7 + $0xa8] sm:$0xff] }
  0x93   :  { %1578 = vmatpush1.bf16.msra.mxu0 %v1577_v47  ;;  %v385_v29 = vld [vmem:[#allocation7 + $0x110] sm:$0xff]  ;;  %v386_v30 = vld [vmem:[#allocation7 + $0x118] sm:$0xff]  ;;  %v1621_v31 = vpack.c.bf16 %v354_v25, %v353_v24  ;;  %v1623_v32 = vpack.c.bf16 %v372_v28, %v371_v27  ;;  %v355_v33 = vld [vmem:[#allocation7 + $0x20] sm:$0xff] }
  0x94   :  { %1580 = vmatprep.subr.bf16.mxu0 %v1579_v48  ;;  %v356_v34 = vld [vmem:[#allocation7 + $0x28] sm:$0xff]  ;;  %v1651_v35 = vpack.c.bf16 %v386_v30, %v385_v29  ;;  %v373_v36 = vld [vmem:[#allocation7 + $0xb0] sm:$0xff]  ;;  %v374_v37 = vld [vmem:[#allocation7 + $0xb8] sm:$0xff] }
  0x95   :  { %1605 = vmatpush3.bf16.msra.mxu1 %v1604_v51  ;;  %v387_v38 = vld [vmem:[#allocation7 + $0x120] sm:$0xff]  ;;  %v388_v39 = vld [vmem:[#allocation7 + $0x128] sm:$0xff]  ;;  %v1625_v40 = vpack.c.bf16 %v356_v34, %v355_v33  ;;  %v1627_v41 = vpack.c.bf16 %v374_v37, %v373_v36  ;;  %v357_v42 = vld [vmem:[#allocation7 + $0x30] sm:$0xff] }
  0x96   :  { %1606 = vmatprep.subr.bf16.mxu1 %v2070_v0  ;;  %v358_v43 = vld [vmem:[#allocation7 + $0x38] sm:$0xff]  ;;  %v1654_v44 = vpack.c.bf16 %v388_v39, %v387_v38  ;;  %v375_v45 = vld [vmem:[#allocation7 + $0xc0] sm:$0xff]  ;;  %v376_v46 = vld [vmem:[#allocation7 + $0xc8] sm:$0xff] }
  0x97   :  { %1582 = vmatpush1.bf16.msra.mxu0 %v1581_v56  ;;  %v389_v47 = vld [vmem:[#allocation7 + $0x130] sm:$0xff]  ;;  %v390_v48 = vld [vmem:[#allocation7 + $0x138] sm:$0xff]  ;;  %v1629_v49 = vpack.c.bf16 %v358_v43, %v357_v42  ;;  %v1631_v50 = vpack.c.bf16 %v376_v46, %v375_v45  ;;  %v359_v51 = vld [vmem:[#allocation7 + $0x40] sm:$0xff] }
  0x98   :  { %1584 = vmatprep.subr.bf16.mxu0 %v1583_v57  ;;  %v360_v52 = vld [vmem:[#allocation7 + $0x48] sm:$0xff]  ;;  %v1657_v53 = vpack.c.bf16 %v390_v48, %v389_v47  ;;  %v377_v54 = vld [vmem:[#allocation7 + $0xd0] sm:$0xff]  ;;  %v378_v55 = vld [vmem:[#allocation7 + $0xd8] sm:$0xff] }
  0x99   :  { %1608 = vmatpush3.bf16.msra.mxu1 %v1607_v60  ;;  %v391_v56 = vld [vmem:[#allocation7 + $0x140] sm:$0xff]  ;;  %v392_v57 = vld [vmem:[#allocation7 + $0x148] sm:$0xff]  ;;  %v1633_v58 = vpack.c.bf16 %v360_v52, %v359_v51  ;;  %v1635_v59 = vpack.c.bf16 %v378_v55, %v377_v54  ;;  %v361_v60 = vld [vmem:[#allocation7 + $0x50] sm:$0xff] }
  0x9a   :  { %1609 = vmatprep.subr.bf16.mxu1 %v2070_v0  ;;  %v362_v61 = vld [vmem:[#allocation7 + $0x58] sm:$0xff]  ;;  %v1660_v62 = vpack.c.bf16 %v392_v57, %v391_v56  ;;  %v379_v63 = vld [vmem:[#allocation7 + $0xe0] sm:$0xff]  ;;  %v380_v2 = vld [vmem:[#allocation7 + $0xe8] sm:$0xff] }
  0x9b   :  { %1586 = vmatpush1.bf16.msra.mxu0 %v1585_v3  ;;  %v1637_v3 = vpack.c.bf16 %v362_v61, %v361_v60  ;;  %v363_v5 = vld [vmem:[#allocation7 + $0x60] sm:$0xff]  ;;  %v364_v6 = vld [vmem:[#allocation7 + $0x68] sm:$0xff]  ;;  %v394_v9 = vld [vmem:[#allocation7 + $0x158] sm:$0xff] }
  0x9c   :  { %1588 = vmatprep.subr.bf16.mxu0 %v1587_v4  ;;  %v1639_v4 = vpack.c.bf16 %v380_v2, %v379_v63  ;;  %v1641_v8 = vpack.c.bf16 %v364_v6, %v363_v5  ;;  %v381_v11 = vld [vmem:[#allocation7 + $0xf0] sm:$0xff]  ;;  %v366_v15 = vld [vmem:[#allocation7 + $0x78] sm:$0xff]  ;;  %v396_v18 = vld [vmem:[#allocation7 + $0x168] sm:$0xff] }
  0x9d   :  { %1611 = vmatpush3.bf16.msra.mxu1 %v1610_v7  ;;  %v393_v7 = vld [vmem:[#allocation7 + $0x150] sm:$0xff]  ;;  %v548_v36 = vld [vmem:[#allocation8 + $0x8] sm:$0xff]  ;;  %v550_v46 = vld [vmem:[#allocation8 + $0x18] sm:$0xff] }
  0x9e   :  { %1612 = vmatprep.subr.bf16.mxu1 %v2070_v0  ;;  %v1663_v10 = vpack.c.bf16 %v394_v9, %v393_v7  ;;  %v365_v14 = vld [vmem:[#allocation7 + $0x70] sm:$0xff]  ;;  %v551_v48 = vld [vmem:[#allocation8 + $0x20] sm:$0xff]  ;;  %v554_v52 = vld [vmem:[#allocation8 + $0x38] sm:$0xff] }
  0x9f   :  { %1590 = vmatpush1.bf16.msra.mxu0 %v1589_v12  ;;  %v382_v12 = vld [vmem:[#allocation7 + $0xf8] sm:$0xff]  ;;  %v1645_v17 = vpack.c.bf16 %v366_v15, %v365_v14  ;;  %v397_v20 = vld [vmem:[#allocation7 + $0x170] sm:$0xff]  ;;  %v555_v54 = vld [vmem:[#allocation8 + $0x40] sm:$0xff] }
  0xa0   :  { %1616 = vmatprep.subr.bf16.mxu0 %v1615_v13  ;;  %v1643_v13 = vpack.c.bf16 %v382_v12, %v381_v11  ;;  %v549_v45 = vld [vmem:[#allocation8 + $0x10] sm:$0xff]  ;;  %v556_v55 = vld [vmem:[#allocation8 + $0x48] sm:$0xff]  ;;  %v559_v60 = vld [vmem:[#allocation8 + $0x60] sm:$0xff] }
  0xa1   :  { %1614 = vmatpush3.bf16.msra.mxu1 %v1613_v16  ;;  %v395_v16 = vld [vmem:[#allocation7 + $0x160] sm:$0xff]  ;;  %v1675_v47 = vpack.c.bf16 %v550_v46, %v549_v45  ;;  %v553_v51 = vld [vmem:[#allocation8 + $0x30] sm:$0xff]  ;;  %v1684_v56 = vpack.c.bf16 %v556_v55, %v555_v54  ;;  %v560_v61 = vld [vmem:[#allocation8 + $0x68] sm:$0xff] }
  0xa2   :  { %272 = vmatmul.mubr.f32.vlgmr.msra.gmra.mrb[0].mxu0 %v141_v21  ;;  %1647 = vmatprep.subr.bf16.mxu1 %v2070_v0  ;;  %v1666_v19 = vpack.c.bf16 %v396_v18, %v395_v16  ;;  %v557_v57 = vld [vmem:[#allocation8 + $0x50] sm:$0xff]  ;;  %v562_v2 = vld [vmem:[#allocation8 + $0x78] sm:$0xff]  ;;  %v642_v5 = vld [vmem:[#allocation10 + $0x8] sm:$0xff] }
  0xa3   :  { %1618 = vmatpush3.bf16.msra.mxu0 %v1617_v22  ;;  %v561_v63 = vld [vmem:[#allocation8 + $0x70] sm:$0xff]  ;;  %v646_v11 = vld [vmem:[#allocation10 + $0x28] sm:$0xff]  ;;  %v648_v14 = vld [vmem:[#allocation10 + $0x38] sm:$0xff] }
  0xa4   :  { %1382 = vmatmul.mubr.f32.vlgmr.msra.gmra.mrb[0].mxu1 %v141_v21  ;;  %1620 = vmatprep.subr.bf16.mxu0 %v1619_v23  ;;  %v398_v21 = vld [vmem:[#allocation7 + $0x178] sm:$0xff]  ;;  %v192_v23 = vlaneseq  ;;  %v643_v6 = vld [vmem:[#allocation10 + $0x10] sm:$0xff]  ;;  %v649_v16 = vld [vmem:[#allocation10 + $0x40] sm:$0xff] }
  0xa5   :  { %1649 = vmatpush3.bf16.msra.mxu1 %v1648_v26  ;;  %1416 = vmatprep.mubr.msk.f32.mxu1 %vm2072_vm0, %v2071_v1  ;;  %v1669_v22 = vpack.c.bf16 %v398_v21, %v397_v20  ;;  %v190_v26 = vld [vmem:[%s2375_s2] sm:$0x7]  ;;  %v751_v54 = vld [vmem:[#allocation11 + $0x80] sm:$0xff] }
  0xa6   :  { %1650 = vmatprep.subr.bf16.mxu1 %v2070_v0  ;;  %v2275_v24 = vshrl.u32 %v192_v23, 7  ;;  %v652_v20 = vld [vmem:[#allocation10 + $0x58] sm:$0xff]  ;;  %v654_v23 = vld [vmem:[#allocation10 + $0x68] sm:$0xff] }
  0xa7   :  { %1622 = vmatpush3.bf16.msra.mxu0 %v1621_v31  ;;  %v738_v45 = vld [vmem:[#allocation11 + $0x18] sm:$0xff] }
  0xa8   :  { %1624 = vmatprep.subr.bf16.mxu0 %v1623_v32  ;;  %v194_v25 = vsub.s32 0, %v2275_v24  ;;  %v198_v27 = vsub.s32 1, %v2275_v24  ;;  %v202_v28 = vsub.s32 2, %v2275_v24 }
  0xa9   :  { %1652 = vmatpush3.bf16.msra.mxu1 %v1651_v35  ;;  %v547_v35 = vld [vmem:[#allocation8] sm:$0xff] }
  0xaa   :  { %1653 = vmatprep.subr.bf16.mxu1 %v2070_v0  ;;  %v195_v29 = vrot.slane %v190_v26, %v194_v25  ;;  %v199_v30 = vrot.slane %v190_v26, %v198_v27  ;;  %v203_v31 = vrot.slane %v190_v26, %v202_v28  ;;  %v1672_v42 = vpack.c.bf16 %v548_v36, %v547_v35 }
  0xab   :  { %1626 = vmatpush3.bf16.msra.mxu0 %v1625_v40 }
  0xac   :  { %1628 = vmatprep.subr.bf16.mxu0 %v1627_v41 }
  0xad   :  { %1655 = vmatpush3.bf16.msra.mxu1 %v1654_v44 }
  0xae   :  { %1656 = vmatprep.subr.bf16.mxu1 %v2070_v0 }
  0xaf   :  { %1630 = vmatpush3.bf16.msra.mxu0 %v1629_v49  ;;  %v552_v49 = vld [vmem:[#allocation8 + $0x28] sm:$0xff] }
  0xb0   :  { %1632 = vmatprep.subr.bf16.mxu0 %v1631_v50  ;;  %v1678_v50 = vpack.c.bf16 %v552_v49, %v551_v48  ;;  %v745_v48 = vld [vmem:[#allocation11 + $0x50] sm:$0xff] }
  0xb1   :  { %1658 = vmatpush3.bf16.msra.mxu1 %v1657_v53  ;;  %v1681_v53 = vpack.c.bf16 %v554_v52, %v553_v51  ;;  %v741_v49 = vld [vmem:[#allocation11 + $0x30] sm:$0xff]  ;;  %v744_v51 = vld [vmem:[#allocation11 + $0x48] sm:$0xff] }
  0xb2   :  { %1659 = vmatprep.subr.bf16.mxu1 %v2070_v0  ;;  %v1725_v52 = vpack.c.bf16 %v744_v51, %v741_v49  ;;  %v781_v51 = vld [vmem:[#allocation11 + $0x170] sm:$0xff] }
  0xb3   :  { %1634 = vmatpush3.bf16.msra.mxu0 %v1633_v58  ;;  %v558_v58 = vld [vmem:[#allocation8 + $0x58] sm:$0xff] }
  0xb4   :  { %1636 = vmatprep.subr.bf16.mxu0 %v1635_v59  ;;  %v1687_v59 = vpack.c.bf16 %v558_v58, %v557_v57  ;;  %v750_v57 = vld [vmem:[#allocation11 + $0x78] sm:$0xff] }
  0xb5   :  { %1661 = vmatpush3.bf16.msra.mxu1 %v1660_v62  ;;  %v1690_v62 = vpack.c.bf16 %v560_v61, %v559_v60  ;;  %v757_v60 = vld [vmem:[#allocation11 + $0xb0] sm:$0xff] }
  0xb6   :  { %1662 = vmatprep.subr.bf16.mxu1 %v2070_v0 }
  0xb7   :  { %1638 = vmatpush3.bf16.msra.mxu0 %v1637_v3  ;;  %v1693_v3 = vpack.c.bf16 %v562_v2, %v561_v63  ;;  %v756_v63 = vld [vmem:[#allocation11 + $0xa8] sm:$0xff] }
  0xb8   :  { %1640 = vmatprep.subr.bf16.mxu0 %v1639_v4  ;;  %v641_v4 = vld [vmem:[#allocation10] sm:$0xff] }
  0xb9   :  { %1664 = vmatpush3.bf16.msra.mxu1 %v1663_v10  ;;  %v1696_v7 = vpack.c.bf16 %v642_v5, %v641_v4  ;;  %v645_v10 = vld [vmem:[#allocation10 + $0x20] sm:$0xff] }
  0xba   :  { %1665 = vmatprep.subr.bf16.mxu1 %v2070_v0  ;;  %v1702_v12 = vpack.c.bf16 %v646_v11, %v645_v10  ;;  %v763_v4 = vld [vmem:[#allocation11 + $0xe0] sm:$0xff]  ;;  %v769_v10 = vld [vmem:[#allocation11 + $0x110] sm:$0xff] }
  0xbb   :  { %1642 = vmatpush3.bf16.msra.mxu0 %v1641_v8  ;;  %v644_v8 = vld [vmem:[#allocation10 + $0x18] sm:$0xff] }
  0xbc   :  { %1644 = vmatprep.subr.bf16.mxu0 %v1643_v13  ;;  %v1699_v9 = vpack.c.bf16 %v644_v8, %v643_v6  ;;  %v647_v13 = vld [vmem:[#allocation10 + $0x30] sm:$0xff]  ;;  %v759_v6 = vld [vmem:[#allocation11 + $0xc0] sm:$0xff] }
  0xbd   :  { %1667 = vmatpush3.bf16.msra.mxu1 %v1666_v19  ;;  %v1705_v15 = vpack.c.bf16 %v648_v14, %v647_v13  ;;  %v651_v19 = vld [vmem:[#allocation10 + $0x50] sm:$0xff]  ;;  %v768_v13 = vld [vmem:[#allocation11 + $0x108] sm:$0xff] }
  0xbe   :  { %1668 = vmatprep.subr.bf16.mxu1 %v2070_v0  ;;  %v1711_v21 = vpack.c.bf16 %v652_v20, %v651_v19  ;;  %v774_v19 = vld [vmem:[#allocation11 + $0x138] sm:$0xff] }
  0xbf   :  { %1646 = vmatpush3.bf16.msra.mxu0 %v1645_v17  ;;  %v650_v17 = vld [vmem:[#allocation10 + $0x48] sm:$0xff] }
  0xc0   :  { %1671 = vmatprep.subr.bf16.mxu0 %v2070_v0  ;;  %v1708_v18 = vpack.c.bf16 %v650_v17, %v649_v16  ;;  %v775_v16 = vld [vmem:[#allocation11 + $0x140] sm:$0xff] }
  0xc1   :  { %1670 = vmatpush3.bf16.msra.mxu1 %v1669_v22  ;;  %v653_v22 = vld [vmem:[#allocation10 + $0x60] sm:$0xff] }
  0xc2   :  { %1695 = vmatprep.subr.bf16.mxu1 %v2070_v0  ;;  %v1714_v26 = vpack.c.bf16 %v654_v23, %v653_v22  ;;  %v740_v22 = vld [vmem:[#allocation11 + $0x28] sm:$0xff]  ;;  %v1174_v23 = vld [vmem:[%s2379_s6] ss:$0 sm:$0xff] }
 0x175   :  { %v273_v32 = vpop.f32.mrb[0].mxu0 }
 0x176   :  { %v274_v33 = vadd.f32 %v273_v32, %v195_v29  ;;  %v275_v34 = vpop.f32.mrb[1].mxu0  ;;  %v1173_v32 = vld [vmem:[%s2377_s4] ss:$0 sm:$0xff] }
 0x177   :  { %v276_v37 = vadd.f32 %v275_v34, %v199_v30  ;;  %v344_v38 = vpop.f32.mrb[0].mxu1 }
 0x178   :  { %v345_v39 = vadd.f32 %v344_v38, %v203_v31  ;;  %v1383_v40 = vpop.f32.mrb[1].mxu1  ;;  %v348_v43 = vmax.f32 %v274_v33, 0.0  ;;  %v655_v38 = vld [vmem:[#allocation10 + $0x70] sm:$0xff] }
 0x179   :  { %v349_v41 = vmax.f32 %v276_v37, 0.0 }
 0x17a   :  { %v350_v44 = vmax.f32 %v345_v39, 0.0  ;;  %v656_v39 = vld [vmem:[#allocation10 + $0x78] sm:$0xff] }
 0x17b   :  { %470 = vmatprep.mubr.f32.mxu0 %v349_v41  ;;  %v1717_v40 = vpack.c.bf16 %v656_v39, %v655_v38  ;;  %v736_v41 = vld [vmem:[#allocation11 + $0x8] sm:$0xff]  ;;  %v755_v38 = vld [vmem:[#allocation11 + $0xa0] sm:$0xff]  ;;  %v758_v39 = vld [vmem:[#allocation11 + $0xb8] sm:$0xff] }
 0x17c   :  { %471 = vmatmul.mubr.f32.vlgmr.msra.gmra.mrb[2].mxu0 %v348_v43  ;;  %1417 = vmatmul.mubr.f32.vlgmr.msra.gmra.mrb[2].mxu1 %v350_v44  ;;  %v735_v43 = vld [vmem:[#allocation11] sm:$0xff] }
 0x17d   :  { %1673 = vmatpush3.bf16.msra.mxu0 %v1672_v42  ;;  %1451 = vmatprep.mubr.msk.f32.mxu0 %vm2072_vm0, %v2071_v1  ;;  %v739_v42 = vld [vmem:[#allocation11 + $0x20] sm:$0xff]  ;;  %v1721_v46 = vpack.c.bf16 %v738_v45, %v735_v43  ;;  %v770_v45 = vld [vmem:[#allocation11 + $0x118] sm:$0xff] }
 0x17e   :  { %1674 = vmatprep.subr.bf16.mxu0 %v2070_v0  ;;  %1486 = vmatprep.mubr.msk.f32.mxu1 %vm2072_vm0, %v2071_v1  ;;  %v1719_v44 = vpack.c.bf16 %v739_v42, %v736_v41  ;;  %v761_v41 = vld [vmem:[#allocation11 + $0xd0] sm:$0xff]  ;;  %v764_v42 = vld [vmem:[#allocation11 + $0xe8] sm:$0xff] }
 0x17f   :  { %1697 = vmatpush3.bf16.msra.mxu1 %v1696_v7  ;;  %v762_v7 = vld [vmem:[#allocation11 + $0xd8] sm:$0xff]  ;;  %v1764_v43 = vpack.c.bf16 %v764_v42, %v761_v41  ;;  %v969_v41 = vld [vmem:[#allocation13 + $0xc8] sm:$0xff] }
 0x180   :  { %1698 = vmatprep.subr.bf16.mxu1 %v2070_v0  ;;  %v1737_v8 = vpack.c.bf16 %v762_v7, %v759_v6  ;;  %v962_v6 = vld [vmem:[#allocation13 + $0x90] sm:$0xff]  ;;  %v963_v7 = vld [vmem:[#allocation13 + $0x98] sm:$0xff] }
 0x181   :  { %1676 = vmatpush3.bf16.msra.mxu0 %v1675_v47  ;;  %v742_v47 = vld [vmem:[#allocation11 + $0x38] sm:$0xff] }
 0x182   :  { %1677 = vmatprep.subr.bf16.mxu0 %v2070_v0 }
 0x183   :  { %1700 = vmatpush3.bf16.msra.mxu1 %v1699_v9  ;;  %v766_v9 = vld [vmem:[#allocation11 + $0xf8] sm:$0xff] }
 0x184   :  { %1701 = vmatprep.subr.bf16.mxu1 %v2070_v0  ;;  %v1739_v11 = vpack.c.bf16 %v769_v10, %v766_v9 }
 0x185   :  { %1679 = vmatpush3.bf16.msra.mxu0 %v1678_v50  ;;  %v1723_v50 = vpack.c.bf16 %v745_v48, %v742_v47  ;;  %v773_v47 = vld [vmem:[#allocation11 + $0x130] sm:$0xff]  ;;  %v776_v48 = vld [vmem:[#allocation11 + $0x148] sm:$0xff] }
 0x186   :  { %1680 = vmatprep.subr.bf16.mxu0 %v2070_v0  ;;  %v1770_v49 = vpack.c.bf16 %v776_v48, %v773_v47  ;;  %v953_v47 = vld [vmem:[#allocation13 + $0x48] sm:$0xff]  ;;  %v970_v48 = vld [vmem:[#allocation13 + $0xd0] sm:$0xff] }
 0x187   :  { %1703 = vmatpush3.bf16.msra.mxu1 %v1702_v12  ;;  %v765_v12 = vld [vmem:[#allocation11 + $0xf0] sm:$0xff] }
 0x188   :  { %1704 = vmatprep.subr.bf16.mxu1 %v2070_v0  ;;  %v1741_v14 = vpack.c.bf16 %v768_v13, %v765_v12  ;;  %v978_v12 = vld [vmem:[#allocation13 + $0x110] sm:$0xff] }
 0x189   :  { %1682 = vmatpush3.bf16.msra.mxu0 %v1681_v53  ;;  %v748_v53 = vld [vmem:[#allocation11 + $0x68] sm:$0xff] }
 0x18a   :  { %1683 = vmatprep.subr.bf16.mxu0 %v2070_v0  ;;  %v1727_v55 = vpack.c.bf16 %v751_v54, %v748_v53  ;;  %v777_v53 = vld [vmem:[#allocation11 + $0x150] sm:$0xff]  ;;  %v780_v54 = vld [vmem:[#allocation11 + $0x168] sm:$0xff] }
 0x18b   :  { %1706 = vmatpush3.bf16.msra.mxu1 %v1705_v15  ;;  %v772_v15 = vld [vmem:[#allocation11 + $0x128] sm:$0xff] }
 0x18c   :  { %1707 = vmatprep.subr.bf16.mxu1 %v2070_v0  ;;  %v1743_v17 = vpack.c.bf16 %v775_v16, %v772_v15  ;;  %v1779_v15 = vpack.c.bf16 %v963_v7, %v962_v6  ;;  %v946_v16 = vld [vmem:[#allocation13 + $0x10] sm:$0xff]  ;;  %v991_v7 = vld [vmem:[#allocation13 + $0x178] sm:$0xff] }
 0x18d   :  { %1685 = vmatpush3.bf16.msra.mxu0 %v1684_v56  ;;  %v747_v56 = vld [vmem:[#allocation11 + $0x60] sm:$0xff]  ;;  %v990_v6 = vld [vmem:[#allocation13 + $0x170] sm:$0xff] }
 0x18e   :  { %1686 = vmatprep.subr.bf16.mxu0 %v2070_v0  ;;  %v1729_v58 = vpack.c.bf16 %v750_v57, %v747_v56  ;;  %v1749_v56 = vpack.c.bf16 %v780_v54, %v777_v53  ;;  %v782_v57 = vld [vmem:[#allocation11 + $0x178] sm:$0xff] }
 0x18f   :  { %1709 = vmatpush3.bf16.msra.mxu1 %v1708_v18  ;;  %v771_v18 = vld [vmem:[#allocation11 + $0x120] sm:$0xff]  ;;  %v987_v53 = vld [vmem:[#allocation13 + $0x158] sm:$0xff] }
 0x190   :  { %1710 = vmatprep.subr.bf16.mxu1 %v2070_v0  ;;  %v1745_v20 = vpack.c.bf16 %v774_v19, %v771_v18  ;;  %v964_v18 = vld [vmem:[#allocation13 + $0xa0] sm:$0xff]  ;;  %v965_v19 = vld [vmem:[#allocation13 + $0xa8] sm:$0xff] }
 0x191   :  { %1688 = vmatpush3.bf16.msra.mxu0 %v1687_v59  ;;  %v754_v59 = vld [vmem:[#allocation11 + $0x98] sm:$0xff] }
 0x192   :  { %1689 = vmatprep.subr.bf16.mxu0 %v2070_v0  ;;  %v1731_v61 = vpack.c.bf16 %v757_v60, %v754_v59  ;;  %v960_v59 = vld [vmem:[#allocation13 + $0x80] sm:$0xff]  ;;  %v961_v60 = vld [vmem:[#allocation13 + $0x88] sm:$0xff] }
 0x193   :  { %1712 = vmatpush3.bf16.msra.mxu1 %v1711_v21  ;;  %v737_v21 = vld [vmem:[#allocation11 + $0x10] sm:$0xff] }
 0x194   :  { %1713 = vmatprep.subr.bf16.mxu1 %v2070_v0 }
 0x195   :  { %1691 = vmatpush3.bf16.msra.mxu0 %v1690_v62  ;;  %v753_v62 = vld [vmem:[#allocation11 + $0x90] sm:$0xff] }
 0x196   :  { %1692 = vmatprep.subr.bf16.mxu0 %v2070_v0  ;;  %v1733_v2 = vpack.c.bf16 %v756_v63, %v753_v62  ;;  %v1175_v62 = vld [vmem:[%s2381_s8] ss:$0 sm:$0xff]  ;;  %v976_v63 = vld [vmem:[#allocation13 + $0x100] sm:$0xff] }
 0x197   :  { %1715 = vmatpush3.bf16.msra.mxu1 %v1714_v26 }
 0x198   :  { %1716 = vmatprep.subr.bf16.mxu1 %v2070_v0 }
 0x199   :  { %1694 = vmatpush3.bf16.msra.mxu0 %v1693_v3  ;;  %v760_v3 = vld [vmem:[#allocation11 + $0xc8] sm:$0xff] }
 0x19a   :  { %1720 = vmatprep.subr.bf16.mxu0 %v1719_v44  ;;  %v1735_v5 = vpack.c.bf16 %v763_v4, %v760_v3  ;;  %v767_v44 = vld [vmem:[#allocation11 + $0x100] sm:$0xff]  ;;  %v945_v4 = vld [vmem:[#allocation13 + $0x8] sm:$0xff] }
 0x19b   :  { %1718 = vmatpush3.bf16.msra.mxu1 %v1717_v40  ;;  %v1761_v40 = vpack.c.bf16 %v758_v39, %v755_v38  ;;  %v944_v3 = vld [vmem:[#allocation13] sm:$0xff]  ;;  %v950_v38 = vld [vmem:[#allocation13 + $0x30] sm:$0xff]  ;;  %v951_v39 = vld [vmem:[#allocation13 + $0x38] sm:$0xff] }
 0x19c   :  { %1751 = vmatprep.subr.bf16.mxu1 %v2070_v0 }
 0x24f   :  { %v1226_v29 = vpop.f32.mrb[2].mxu0  ;;  %v542_v30 = vpop.f32.mrb[2].mxu1 }
 0x250   :  { %v1227_v31 = vpop.f32.mrb[3].mxu0  ;;  %v1418_v33 = vpop.f32.mrb[3].mxu1 }
 0x251   :  { %v1228_v34 = vadd.f32 %v1227_v31, %v1226_v29  ;;  %v1752_v29 = vpack.c.bf16 %v740_v22, %v737_v21  ;;  %v746_v33 = vld [vmem:[#allocation11 + $0x58] sm:$0xff]  ;;  %v980_v22 = vld [vmem:[#allocation13 + $0x120] sm:$0xff] }
 0x253   :  { %v473_v35 = vadd.f32 %v1228_v34, %v1173_v32  ;;  %v743_v32 = vld [vmem:[#allocation11 + $0x40] sm:$0xff] }
 0x254   :  { %v1755_v34 = vpack.c.bf16 %v746_v33, %v743_v32  ;;  %v967_v32 = vld [vmem:[#allocation13 + $0xb8] sm:$0xff] }
 0x255   :  { %v543_v36 = vadd.f32 %v542_v30, %v473_v35  ;;  %v749_v35 = vld [vmem:[#allocation11 + $0x70] sm:$0xff] }
 0x257   :  { %v546_v37 = vmax.f32 %v543_v36, 0.0  ;;  %v752_v36 = vld [vmem:[#allocation11 + $0x88] sm:$0xff] }
 0x259   :  { %1452 = vmatmul.mubr.f32.vlgmr.msra.gmra.mrb[4].mxu0 %v546_v37  ;;  %v1758_v37 = vpack.c.bf16 %v752_v36, %v749_v35  ;;  %v982_v35 = vld [vmem:[#allocation13 + $0x130] sm:$0xff]  ;;  %v983_v36 = vld [vmem:[#allocation13 + $0x138] sm:$0xff] }
 0x25a   :  { %864 = vmatprep.mubr.f32.mxu0 %v2071_v1  ;;  %1722 = vmatpush1.bf16.msra.mxu0 %v1721_v46  ;;  %v1767_v46 = vpack.c.bf16 %v770_v45, %v767_v44  ;;  %v1817_v42 = vpack.c.bf16 %v983_v36, %v982_v35  ;;  %v984_v44 = vld [vmem:[#allocation13 + $0x140] sm:$0xff] }
 0x25b   :  { %1724 = vmatprep.subr.bf16.mxu0 %v1723_v50  ;;  %v778_v50 = vld [vmem:[#allocation11 + $0x158] sm:$0xff] }
 0x25e   :  { %1726 = vmatpush1.bf16.msra.mxu0 %v1725_v52  ;;  %v1747_v52 = vpack.c.bf16 %v781_v51, %v778_v50 }
 0x25f   :  { %1728 = vmatprep.subr.bf16.mxu0 %v1727_v55  ;;  %v779_v55 = vld [vmem:[#allocation11 + $0x160] sm:$0xff] }
 0x262   :  { %1730 = vmatpush1.bf16.msra.mxu0 %v1729_v58  ;;  %v1773_v58 = vpack.c.bf16 %v782_v57, %v779_v55  ;;  %v954_v55 = vld [vmem:[#allocation13 + $0x50] sm:$0xff]  ;;  %v972_v57 = vld [vmem:[#allocation13 + $0xe0] sm:$0xff] }
 0x263   :  { %1732 = vmatprep.subr.bf16.mxu0 %v1731_v61  ;;  %v1775_v61 = vpack.c.bf16 %v961_v60, %v960_v59 }
 0x266   :  { %1734 = vmatpush1.bf16.msra.mxu0 %v1733_v2  ;;  %v977_v2 = vld [vmem:[#allocation13 + $0x108] sm:$0xff] }
 0x267   :  { %1736 = vmatprep.subr.bf16.mxu0 %v1735_v5  ;;  %v1808_v10 = vpack.c.bf16 %v977_v2, %v976_v63 }
 0x26a   :  { %1738 = vmatpush1.bf16.msra.mxu0 %v1737_v8 }
 0x26b   :  { %1740 = vmatprep.subr.bf16.mxu0 %v1739_v11  ;;  %v1777_v11 = vpack.c.bf16 %v945_v4, %v944_v3  ;;  %v956_v3 = vld [vmem:[#allocation13 + $0x60] sm:$0xff]  ;;  %v957_v4 = vld [vmem:[#allocation13 + $0x68] sm:$0xff] }
 0x26e   :  { %1742 = vmatpush1.bf16.msra.mxu0 %v1741_v14  ;;  %v979_v14 = vld [vmem:[#allocation13 + $0x118] sm:$0xff] }
 0x26f   :  { %1744 = vmatprep.subr.bf16.mxu0 %v1743_v17  ;;  %v947_v17 = vld [vmem:[#allocation13 + $0x18] sm:$0xff] }
 0x270   :  { %v1781_v21 = vpack.c.bf16 %v947_v17, %v946_v16 }
 0x272   :  { %1746 = vmatpush1.bf16.msra.mxu0 %v1745_v20  ;;  %v1811_v20 = vpack.c.bf16 %v979_v14, %v978_v12  ;;  %v958_v12 = vld [vmem:[#allocation13 + $0x70] sm:$0xff] }
 0x273   :  { %1748 = vmatprep.subr.bf16.mxu0 %v1747_v52  ;;  %v986_v52 = vld [vmem:[#allocation13 + $0x150] sm:$0xff] }
 0x274   :  { %v1823_v59 = vpack.c.bf16 %v987_v53, %v986_v52 }
 0x276   :  { %1750 = vmatpush1.bf16.msra.mxu0 %v1749_v56  ;;  %v955_v56 = vld [vmem:[#allocation13 + $0x58] sm:$0xff] }
 0x277   :  { %1776 = vmatprep.subr.bf16.mxu0 %v1775_v61  ;;  %v1797_v60 = vpack.c.bf16 %v955_v56, %v954_v55  ;;  %v988_v61 = vld [vmem:[#allocation13 + $0x160] sm:$0xff] }
 0x32c   :  { %v636_v26 = vpop.f32.mrb[4].mxu0 }
 0x32d   :  { %v637_v30 = vadd.f32 %v1174_v23, %v636_v26  ;;  %v1453_v31 = vpop.f32.mrb[5].mxu0  ;;  %v981_v23 = vld [vmem:[#allocation13 + $0x128] sm:$0xff]  ;;  %v1783_v26 = vpack.c.bf16 %v965_v19, %v964_v18 }
 0x32e   :  { %v966_v31 = vld [vmem:[#allocation13 + $0xb0] sm:$0xff]  ;;  %v1814_v33 = vpack.c.bf16 %v981_v23, %v980_v22 }
 0x32f   :  { %640 = vst [vmem:[#allocation14] sm:$0xff] %v637_v30  ;;  %1487 = vmatmul.mubr.f32.vlgmr.msra.gmra.mrb[4].mxu1 %v637_v30  ;;  %v949_v30 = vld [vmem:[#allocation13 + $0x28] sm:$0xff] }
 0x330   :  { %1753 = vmatpush3.bf16.msra.mxu1 %v1752_v29  ;;  %1521 = vmatprep.mubr.msk.f32.mxu1 %vm2072_vm0, %v2071_v1  ;;  %v948_v29 = vld [vmem:[#allocation13 + $0x20] sm:$0xff] }
 0x331   :  { %1754 = vmatprep.subr.bf16.mxu1 %v2070_v0 }
 0x334   :  { %1756 = vmatpush3.bf16.msra.mxu1 %v1755_v34  ;;  %v1785_v34 = vpack.c.bf16 %v949_v30, %v948_v29 }
 0x335   :  { %1757 = vmatprep.subr.bf16.mxu1 %v2070_v0 }
 0x338   :  { %1759 = vmatpush3.bf16.msra.mxu1 %v1758_v37  ;;  %v1787_v37 = vpack.c.bf16 %v967_v32, %v966_v31 }
 0x339   :  { %1760 = vmatprep.subr.bf16.mxu1 %v2070_v0 }
 0x33c   :  { %1762 = vmatpush3.bf16.msra.mxu1 %v1761_v40  ;;  %v968_v40 = vld [vmem:[#allocation13 + $0xc0] sm:$0xff] }
 0x33d   :  { %1763 = vmatprep.subr.bf16.mxu1 %v2070_v0  ;;  %v1791_v45 = vpack.c.bf16 %v969_v41, %v968_v40 }
 0x340   :  { %1765 = vmatpush3.bf16.msra.mxu1 %v1764_v43  ;;  %v1789_v43 = vpack.c.bf16 %v951_v39, %v950_v38 }
 0x341   :  { %1766 = vmatprep.subr.bf16.mxu1 %v2070_v0 }
 0x344   :  { %1768 = vmatpush3.bf16.msra.mxu1 %v1767_v46  ;;  %v952_v46 = vld [vmem:[#allocation13 + $0x40] sm:$0xff] }
 0x345   :  { %1769 = vmatprep.subr.bf16.mxu1 %v2070_v0  ;;  %v1793_v51 = vpack.c.bf16 %v953_v47, %v952_v46 }
 0x348   :  { %1771 = vmatpush3.bf16.msra.mxu1 %v1770_v49  ;;  %v971_v49 = vld [vmem:[#allocation13 + $0xd8] sm:$0xff] }
 0x349   :  { %1772 = vmatprep.subr.bf16.mxu1 %v2070_v0  ;;  %v1795_v54 = vpack.c.bf16 %v971_v49, %v970_v48 }
 0x34c   :  { %1774 = vmatpush3.bf16.msra.mxu1 %v1773_v58  ;;  %v973_v58 = vld [vmem:[#allocation13 + $0xe8] sm:$0xff] }
 0x34d   :  { %1807 = vmatprep.subr.bf16.mxu1 %v2070_v0  ;;  %v1799_v63 = vpack.c.bf16 %v973_v58, %v972_v57 }
 0x402   :  { %v730_v5 = vpop.f32.mrb[4].mxu1 }
 0x403   :  { %v731_v8 = vadd.f32 %v1175_v62, %v730_v5  ;;  %v1488_v9 = vpop.f32.mrb[5].mxu1  ;;  %v989_v62 = vld [vmem:[#allocation13 + $0x168] sm:$0xff]  ;;  %v1801_v5 = vpack.c.bf16 %v957_v4, %v956_v3 }
 0x404   :  { %v1826_v2 = vpack.c.bf16 %v989_v62, %v988_v61  ;;  %v974_v9 = vld [vmem:[#allocation13 + $0xf0] sm:$0xff] }
 0x405   :  { %v734_v13 = vmax.f32 %v731_v8, 0.0  ;;  %v1829_v8 = vpack.c.bf16 %v991_v7, %v990_v6 }
 0x407   :  { %865 = vmatmul.mubr.f32.vlgmr.msra.gmra.mrb[6].mxu0 %v734_v13  ;;  %1522 = vmatmul.mubr.f32.vlgmr.msra.gmra.mrb[6].mxu1 %v734_v13  ;;  %v959_v13 = vld [vmem:[#allocation13 + $0x78] sm:$0xff] }
 0x408   :  { %1809 = vmatpush3.bf16.msra.mxu1 %v1808_v10  ;;  %1778 = vmatpush3.bf16.msra.mxu0 %v1777_v11  ;;  %v975_v10 = vld [vmem:[#allocation13 + $0xf8] sm:$0xff]  ;;  %v1805_v14 = vpack.c.bf16 %v959_v13, %v958_v12 }
 0x409   :  { %1810 = vmatprep.subr.bf16.mxu1 %v2070_v0  ;;  %1780 = vmatprep.subr.bf16.mxu0 %v1779_v15  ;;  %v1803_v11 = vpack.c.bf16 %v975_v10, %v974_v9 }
 0x40a   :  { %1556 = vmatprep.mubr.msk.f32.mxu1 %vm2072_vm0, %v2071_v1  ;;  %v985_v1 = vld [vmem:[#allocation13 + $0x148] sm:$0xff] }
 0x40b   :  { %v1820_v50 = vpack.c.bf16 %v985_v1, %v984_v44 }
 0x40c   :  { %1812 = vmatpush3.bf16.msra.mxu1 %v1811_v20  ;;  %1782 = vmatpush3.bf16.msra.mxu0 %v1781_v21 }
 0x40d   :  { %1813 = vmatprep.subr.bf16.mxu1 %v2070_v0  ;;  %1784 = vmatprep.subr.bf16.mxu0 %v1783_v26 }
 0x410   :  { %1815 = vmatpush3.bf16.msra.mxu1 %v1814_v33  ;;  %1786 = vmatpush3.bf16.msra.mxu0 %v1785_v34 }
 0x411   :  { %1816 = vmatprep.subr.bf16.mxu1 %v2070_v0  ;;  %1788 = vmatprep.subr.bf16.mxu0 %v1787_v37 }
 0x414   :  { %1818 = vmatpush3.bf16.msra.mxu1 %v1817_v42  ;;  %1790 = vmatpush3.bf16.msra.mxu0 %v1789_v43 }
 0x415   :  { %1819 = vmatprep.subr.bf16.mxu1 %v2070_v0  ;;  %1792 = vmatprep.subr.bf16.mxu0 %v1791_v45 }
 0x418   :  { %1821 = vmatpush3.bf16.msra.mxu1 %v1820_v50  ;;  %1794 = vmatpush3.bf16.msra.mxu0 %v1793_v51 }
 0x419   :  { %1822 = vmatprep.subr.bf16.mxu1 %v2070_v0  ;;  %1796 = vmatprep.subr.bf16.mxu0 %v1795_v54 }
 0x41c   :  { %1824 = vmatpush3.bf16.msra.mxu1 %v1823_v59  ;;  %1798 = vmatpush3.bf16.msra.mxu0 %v1797_v60 }
 0x41d   :  { %1825 = vmatprep.subr.bf16.mxu1 %v2070_v0  ;;  %1800 = vmatprep.subr.bf16.mxu0 %v1799_v63 }
 0x420   :  { %1827 = vmatpush3.bf16.msra.mxu1 %v1826_v2  ;;  %1802 = vmatpush3.bf16.msra.mxu0 %v1801_v5 }
 0x421   :  { %1828 = vmatprep.subr.bf16.mxu1 %v2070_v0  ;;  %1804 = vmatprep.subr.bf16.mxu0 %v1803_v11  ;;  %v783_v0 = vld [vmem:[%s2383_s10] sm:$0x7]  ;;  %s2073_s10 = smov [#allocation14]  }
 0x422   :  { %v788_v15 = vrot.slane %v783_v0, %v194_v25  ;;  %v796_v16 = vrot.slane %v783_v0, %v202_v28  ;;  %v792_v17 = vrot.slane %v783_v0, %v198_v27  ;;  %s1147_s15 = sshll.u32 %s2073_s10, 4  ;;  %s1148_s15 = int_to_ptr.vmem [resolvable:$true] %s1147_s15 }
 0x423   :  { %s2003_s5 = scalar_lea.vmem %s1148_s15, 128  ;;  %p2008_p1 = scmp.lt.s32.totalorder %s1148_s15, %s1148_s15 }
 0x424   :  { %1830 = vmatpush3.bf16.msra.mxu1 %v1829_v8  ;;  %1806 = vmatpush3.bf16.msra.mxu0 %v1805_v14  ;;  %p2004_p0 = scmp.ne.s32.totalorder %s1148_s15, %s2003_s5  ;;  %p2009_p2 = scmp.lt.s32.totalorder %s2003_s5, %s2003_s5 }
 0x426   :  { %p2010_p3 = por %p2009_p2, %p2008_p1 }
 0x428   :  { %p2011_p4 = pnand %p2010_p3, %p2004_p0 }
 0x4da   :  { %v866_v18 = vpop.f32.mrb[6].mxu0  ;;  %v937_v19 = vpop.f32.mrb[6].mxu1 }
 0x4db   :  { %v867_v20 = vadd.f32 %v866_v18, %v788_v15  ;;  %v938_v21 = vadd.f32 %v937_v19, %v796_v16  ;;  %v868_v22 = vpop.f32.mrb[7].mxu0  ;;  %v1523_v23 = vpop.f32.mrb[7].mxu1 }
 0x4dc   :  { %v869_v26 = vadd.f32 %v868_v22, %v792_v17 }
 0x4dd   :  { %v943_v29 = vmax.f32 %v938_v21, 0.0  ;;  %v941_v31 = vmax.f32 %v867_v20, 0.0 }
 0x4de   :  { %v942_v30 = vmax.f32 %v869_v26, 0.0 }
 0x4df   :  { %1557 = vmatmul.mubr.f32.vlgmr.msra.gmra.mrb[8].mxu1 %v943_v29 }
 0x4e0   :  { %1063 = vmatprep.mubr.f32.mxu0 %v942_v30 }
 0x4e1   :  { %1064 = vmatmul.mubr.f32.vlgmr.msra.gmra.mrb[8].mxu0 %v941_v31 }
 0x4e2   :  { %2014 = shalt.err (!%p2011_p4)
}
 0x4e3   :  { %s2015_s3 = scalar_lea.hbm %s2386_s13, 128 }
 0x4e4   :  { %p2016_p5 = scmp.ne.s32.totalorder %s2386_s13, %s2015_s3  ;;  %p2019_p6 = scmp.lt.u32.totalorder %s2015_s3, %s2386_s13 }
 0x4e6   :  { %p2021_p7 = pnand %p2019_p6, %p2016_p5 }
 0x4e8   :  { %2024 = shalt.err (!%p2021_p7)
}
 0x4e9   :  { %1150 = dma.vmem_to_hbm [thread:$0]  %s1148_s15, 128, %s2386_s13, [#allocation4]   ;;  %v1176_v28 = vld [vmem:[%s2385_s12] ss:$0 sm:$0xff] }
 0x4ea   :  { %s2074_s21 = smov [#allocation15]  }
 0x4eb   :  { %s1157_s9 = sshll.u32 %s2074_s21, 4  ;;  %s1158_s9 = int_to_ptr.vmem [resolvable:$true] %s1157_s9 }
 0x4ec   :  { %s2025_s7 = scalar_lea.vmem %s1158_s9, 128  ;;  %p2030_p9 = scmp.lt.s32.totalorder %s1158_s9, %s1158_s9 }
 0x4ed   :  { %p2026_p8 = scmp.ne.s32.totalorder %s1158_s9, %s2025_s7  ;;  %p2031_p10 = scmp.lt.s32.totalorder %s2025_s7, %s2025_s7 }
 0x4ef   :  { %p2032_p11 = por %p2031_p10, %p2030_p9 }
 0x4f1   :  { %p2033_p12 = pnand %p2032_p11, %p2026_p8 }
 0x5b2   :  { %v1135_v24 = vpop.f32.mrb[8].mxu1 }
 0x5b3   :  { %v1558_v25 = vpop.f32.mrb[9].mxu1 }
 0x5b4   :  { %v1329_v27 = vpop.f32.mrb[8].mxu0 }
 0x5b5   :  { %v1330_v32 = vpop.f32.mrb[9].mxu0 }
 0x5b6   :  { %v1331_v33 = vadd.f32 %v1330_v32, %v1329_v27 }
 0x5b8   :  { %v1066_v34 = vadd.f32 %v1331_v33, %v1176_v28 }
 0x5ba   :  { %v1136_v35 = vadd.f32 %v1135_v24, %v1066_v34 }
 0x5bc   :  { %1847 = vtanh.f32 %v1136_v35 }
 0x5c6   :  { %v1848_v36 = vpop.eup %1847 }
 0x5c7   :  { %1140 = vst [vmem:[#allocation15] sm:$0xff] %v1848_v36 }
 0x5c8   :  { %2036 = shalt.err (!%p2033_p12)
}
 0x5c9   :  { %s2037_s12 = scalar_lea.hbm %s2387_s14, 128 }
 0x5ca   :  { %p2038_p13 = scmp.ne.s32.totalorder %s2387_s14, %s2037_s12  ;;  %p2041_p0 = scmp.lt.u32.totalorder %s2037_s12, %s2387_s14 }
 0x5cc   :  { %p2043_p1 = pnand %p2041_p0, %p2038_p13 }
 0x5ce   :  { %2046 = shalt.err (!%p2043_p1)
}
 0x5cf   :  { %1160 = dma.vmem_to_hbm [thread:$0]  %s1158_s9, 128, %s2387_s14, [#allocation16]  }
 0x5d0   :  { %2055 = dma.done.wait [#allocation4], 128  }
 0x5d1   :  { %2056 = vsyncadd [#allocation4], 4294967168 }
 0x5d2   :  { %2057 = dma.done.wait [#allocation16], 128  }
 0x5d3   :  { %2058 = vsyncadd [#allocation16], 4294967168 }
 0x5d4   :  { %1167 = vsyncpa [#allocation3], 1 }
 0x5d5   :  { %1168 = vsyncpa [#allocation6], 1 }
 0x5d6   :  { %1169 = vsyncpa [#allocation9], 1 }
 0x5d7   :  { %1170 = vsyncpa [#allocation12], 1 }
 0x5d8   :  { %1171 = vsyncpa [#allocation4], 1 }
 0x5d9   :  { %1172 = vsyncpa [#allocation16], 1 }

</bundles_post_ra>
